<compile_context>
chip_gen: v7x
topology: tpu7x:2x2x1
jax: 0.10.0
libtpu: 0.0.40
codegen_flags: <defaults>
</compile_context>

<pallas_src>
import functools

import jax
import jax.numpy as jnp
from jax import lax
from jax.experimental import pallas as pl
from jax.experimental.pallas import tpu as pltpu

IGNORE_INDEX = 255
SMOOTH = 1e-10
CE_WEIGHT = 0.5
DICE_WEIGHT = 0.5


def _vmem_budgets():
    """Generation-dependent scoped-VMEM limit and tile working-set budget."""
    cap = None
    try:
        info = pltpu.get_tpu_info()
        cap = getattr(info, "vmem_capacity_bytes", None)
    except Exception:
        cap = None
    if not cap or cap <= 0:
        cap = 64 * 1024 * 1024  # conservative (v7x-sized) fallback
    cap = int(cap)
    limit = max(32 * 1024 * 1024, cap * 3 // 4)      # 96 MiB on v5e/v6e, 48 MiB on v7x
    budget = max(16 * 1024 * 1024, cap * 45 // 100)  # 57 MiB on v5e/v6e, 28 MiB on v7x
    return limit, budget


def _choose_tile_s(num_classes, spatial, itemsize, budget_bytes):
    """Largest lane-tile (multiple of 128) whose working set fits the budget."""
    # Bytes per lane of TILE_S:
    #   double-buffered logits + target input blocks : 2 * (C*itemsize + 4)
    #   f32 (C, T) compute temporaries (x, ez, probs, selects, iota, ...)
    #   (1, T) masks / lse / picked
    per_lane = (2 * (num_classes * itemsize + 4)
                + 7 * num_classes * 4
                + 32)
    tile = budget_bytes // per_lane
    tile = min(tile, 64 * 1024)                  # compile-time sanity cap
    s_ceil = -(-spatial // 128) * 128            # no point tiling past S
    tile = min(tile, s_ceil)
    tile = max(128, (tile // 128) * 128)
    return tile


def _ce_dice_kernel(x_ref, t_ref, o_inter, o_cardp, o_ce, o_cnt,
                    inter_acc, cardp_acc, ce_acc, cnt_acc,
                    *, spatial, tiles_per_split, needs_mask):
    sp = pl.program_id(0)      # spatial-split axis (v7x megacore feeding)
    t = pl.program_id(2)       # spatial tile index within the split

    # ---- reset per-(split, batch) accumulators on the first spatial tile ----
    @pl.when(t == 0)
    def _():
        inter_acc[...] = jnp.zeros_like(inter_acc)
        cardp_acc[...] = jnp.zeros_like(cardp_acc)
        ce_acc[...] = jnp.zeros_like(ce_acc)
        cnt_acc[...] = jnp.zeros_like(cnt_acc)

    x = x_ref[0].astype(jnp.float32)       # (C, T) logits tile (native -> f32)
    tgt = t_ref[0]                         # (1, T) int32 targets
    C, T = x.shape

    # global lane offset of this tile (logical, un-clamped)
    start = (sp * tiles_per_split + t) * T

    if needs_mask:
        lane = lax.broadcasted_iota(jnp.int32, (1, T), 1)
        in_b = (start + lane) < spatial                    # (1, T) bool
        tgt = jnp.where(in_b, tgt, -1)                     # sanitize OOB targets

    c_ids = lax.broadcasted_iota(jnp.int32, (C, T), 0)
    onehot = c_ids == tgt                                  # (C, T) bool, never f32
    valid = jnp.logical_and(tgt != IGNORE_INDEX, tgt >= 0)  # (1, T) CE mask

    # ---- numerically stable softmax / log-sum-exp over the class axis ----
    m = jnp.max(x, axis=0, keepdims=True)                  # (1, T)
    ez = jnp.exp(x - m)                                    # (C, T) (EUP)
    denom = jnp.sum(ez, axis=0, keepdims=True)             # (1, T), >= 1
    r = pl.reciprocal(denom, approx=True)                  # EUP slot
    r = r * (2.0 - denom * r)                              # one Newton step
    probs = ez * r                                         # (C, T)
    lse = m + jnp.log(denom)                               # (1, T)

    # ---- cross-entropy partials -> (1, 1) accumulators ----
    picked = jnp.sum(jnp.where(onehot, x, 0.0), axis=0, keepdims=True)   # (1, T)
    ce_tile = jnp.where(valid, lse - picked, 0.0)   # where-select: garbage lanes stay 0
    ce_acc[...] += jnp.sum(ce_tile, axis=1, keepdims=True)
    cnt_acc[...] += jnp.sum(valid.astype(jnp.float32), axis=1, keepdims=True)

    # ---- dice partials: per-tile lane reduce (XLU) into tiny (C, 1) scratch ----
    inter_acc[...] += jnp.sum(jnp.where(onehot, probs, 0.0), axis=1, keepdims=True)
    if needs_mask:
        full_tile = (start + T) <= spatial    # only the tail tile pays the mask

        @pl.when(full_tile)
        def _():
            cardp_acc[...] += jnp.sum(probs, axis=1, keepdims=True)

        @pl.when(jnp.logical_not(full_tile))
        def _():
            cardp_acc[...] += jnp.sum(jnp.where(in_b, probs, 0.0),
                                      axis=1, keepdims=True)
    else:
        cardp_acc[...] += jnp.sum(probs, axis=1, keepdims=True)

    # ---- write per-(split, batch) partials on the last tile of this split ----
    @pl.when(t == pl.num_programs(2) - 1)
    def _():
        o_inter[0, 0] = inter_acc[...]
        o_cardp[0, 0] = cardp_acc[...]
        o_ce[0, 0] = ce_acc[...]
        o_cnt[0, 0] = cnt_acc[...]


def ce_dice_loss(logits_nchw, target, *, tile_s=None):
    """logits_nchw: (N, C, H, W) float; target: (N, H, W) or (N, 1, H, W) int."""
    N, C, H, W = logits_nchw.shape
    if target.ndim == 4:
        target = jnp.squeeze(target, axis=1)
    # TODO(synk): bilinear (align_corners=True) resize branch not implemented.
    assert target.shape == (N, H, W), "logits/target spatial sizes must match"
    S = H * W
    itemsize = jnp.dtype(logits_nchw.dtype).itemsize

    vmem_limit, vmem_budget = _vmem_budgets()
    if tile_s is None:
        tile_s = _choose_tile_s(C, S, itemsize, vmem_budget)
    assert tile_s % 128 == 0

    nt_total = -(-S // tile_s)          # true number of spatial tiles

    # If N is odd (incl. N == 1), split the spatial tiles across a leading
    # parallel axis so both v7x TensorCores get work.
    n_split = 1
    if N % 2 == 1:
        if nt_total < 2 and tile_s > 128:
            half = -(-S // 2)
            tile_s = max(128, -(-half // 128) * 128)
            nt_total = -(-S // tile_s)
        if nt_total >= 2:
            n_split = 2
    tiles_per_split = -(-nt_total // n_split)
    needs_mask = n_split * tiles_per_split * tile_s > S

    # Keep logits in their native dtype through the DMA (bf16 halves HBM
    # traffic); upcast to f32 happens inside the kernel. No padding copies.
    x = logits_nchw.reshape(N, C, S)
    t = target.astype(jnp.int32).reshape(N, 1, S)

    kernel = functools.partial(
        _ce_dice_kernel, spatial=S, tiles_per_split=tiles_per_split,
        needs_mask=needs_mask)

    def in_map(sp, b, tt):
        # clamp so duplicated / overhanging blocks never index past the array;
        # their contributions are zeroed in-kernel by the lane mask.
        return (b, 0, jnp.minimum(sp * tiles_per_split + tt, nt_total - 1))

    def out_map(sp, b, tt):
        return (sp, b, 0, 0)

    out_shape = (
        jax.ShapeDtypeStruct((n_split, N, C, 1), jnp.float32),  # intersection
        jax.ShapeDtypeStruct((n_split, N, C, 1), jnp.float32),  # card(probs)
        jax.ShapeDtypeStruct((n_split, N, 1, 1), jnp.float32),  # CE sum
        jax.ShapeDtypeStruct((n_split, N, 1, 1), jnp.float32),  # valid count
    )
    out_specs = (
        pl.BlockSpec((1, 1, C, 1), out_map),
        pl.BlockSpec((1, 1, C, 1), out_map),
        pl.BlockSpec((1, 1, 1, 1), out_map),
        pl.BlockSpec((1, 1, 1, 1), out_map),
    )

    cost = pl.CostEstimate(
        flops=14 * N * C * S,
        transcendentals=N * C * S,
        bytes_accessed=N * C * S * itemsize + N * S * 4,
    )

    inter_p, cardp_p, ce_p, cnt_p = pl.pallas_call(
        kernel,
        out_shape=out_shape,
        grid_spec=pltpu.PrefetchScalarGridSpec(
            num_scalar_prefetch=0,
            grid=(n_split, N, tiles_per_split),
            in_specs=[
                pl.BlockSpec((1, C, tile_s), in_map),
                pl.BlockSpec((1, 1, tile_s), in_map),
            ],
            out_specs=out_specs,
            scratch_shapes=[
                pltpu.VMEM((C, 1), jnp.float32),   # dice intersection partials
                pltpu.VMEM((C, 1), jnp.float32),   # dice card(probs) partials
                pltpu.VMEM((1, 1), jnp.float32),   # CE sum partials
                pltpu.VMEM((1, 1), jnp.float32),   # valid-pixel count partials
            ],
        ),
        compiler_params=pltpu.CompilerParams(
            dimension_semantics=("parallel", "parallel", "arbitrary"),
            vmem_limit_bytes=vmem_limit,
        ),
        cost_estimate=cost,
    )(x, t)

    # ---- tiny final combines in plain JAX ----
    inter = jnp.sum(inter_p[..., 0], axis=0)          # (N, C)
    cardp = jnp.sum(cardp_p[..., 0], axis=0)          # (N, C)
    ce_sum = jnp.sum(ce_p)
    cnt = jnp.sum(cnt_p)

    # per-(batch, class) target cardinality (dropped from the kernel; the target
    # is tiny so this histogram is effectively free and fuses in XLA)
    tgt_flat = target.astype(jnp.int32).reshape(N, S)
    cardt = jnp.sum(
        (tgt_flat[:, None, :] ==
         jnp.arange(C, dtype=jnp.int32)[None, :, None]).astype(jnp.float32),
        axis=-1)                                       # (N, C)

    ce = ce_sum / jnp.maximum(cnt, 1.0)
    dice_per = 1.0 - (2.0 * inter + SMOOTH) / (cardp + cardt + SMOOTH)
    dice = jnp.mean(dice_per)
    return CE_WEIGHT * ce + DICE_WEIGHT * dice


def ce_dice_loss_ref(logits_nchw, target):
    """Pure-JAX reference mirroring the PyTorch module (same assumptions)."""
    N, C, H, W = logits_nchw.shape
    if target.ndim == 4:
        target = jnp.squeeze(target, axis=1)
    target = target.astype(jnp.int32)

    logp = jax.nn.log_softmax(logits_nchw.astype(jnp.float32), axis=1)
    onehot = jax.nn.one_hot(target, C, axis=1, dtype=jnp.float32)  # (N,C,H,W)
    valid = (target != IGNORE_INDEX).astype(jnp.float32)
    ce_pix = -jnp.sum(logp * onehot, axis=1) * valid
    ce = jnp.sum(ce_pix) / jnp.maximum(jnp.sum(valid), 1.0)

    probs = jax.nn.softmax(logits_nchw.astype(jnp.float32), axis=1)
    inter = jnp.sum(probs * onehot, axis=(2, 3))
    union = jnp.sum(probs, axis=(2, 3)) + jnp.sum(onehot, axis=(2, 3))
    dice = jnp.mean(1.0 - (2.0 * inter + SMOOTH) / (union + SMOOTH))
    return CE_WEIGHT * ce + DICE_WEIGHT * dice


if __name__ == "__main__":
    key = jax.random.PRNGKey(0)
    k1, k2, k3, k4, k5, k6 = jax.random.split(key, 6)

    # 1) basic: even batch, single spatial tile, auto tile size
    N, C, H, W = 2, 4, 16, 16
    logits = jax.random.normal(k1, (N, C, H, W), dtype=jnp.float32)
    target = jax.random.randint(k2, (N, H, W), 0, C, dtype=jnp.int32)
    loss = jax.block_until_ready(ce_dice_loss(logits, target))
    ref = jax.block_until_ready(ce_dice_loss_ref(logits, target))
    assert jnp.isfinite(loss), "non-finite loss from kernel"
    assert abs(float(loss) - float(ref)) < 5e-4, (float(loss), float(ref))

    # 2) ragged spatial tail (no logits padding copy) + ignore_index + 2 tiles
    #    (S = 144 with TILE_S = 128 -> tail tile is partially out-of-bounds)
    N2, C2, H2, W2 = 2, 4, 12, 12
    logits2 = jax.random.normal(k3, (N2, C2, H2, W2), dtype=jnp.float32)
    target2 = jax.random.randint(k4, (N2, H2, W2), 0, C2, dtype=jnp.int32)
    target2 = target2.at[0, 0, :3].set(IGNORE_INDEX)
    loss2 = jax.block_until_ready(ce_dice_loss(logits2, target2, tile_s=128))
    ref2 = jax.block_until_ready(ce_dice_loss_ref(logits2, target2))
    assert jnp.isfinite(loss2), "non-finite loss from kernel (ragged case)"
    assert abs(float(loss2) - float(ref2)) < 5e-4, (float(loss2), float(ref2))

    # 3) odd batch (N=1) -> spatial split across the two v7x TensorCores, odd
    #    tile count (exercises the clamped duplicate block), 4-D target,
    #    non-power-of-two class count, ignore_index
    N3, C3, H3, W3 = 1, 5, 18, 18      # S = 324 -> 3 tiles of 128, split = 2
    logits3 = jax.random.normal(k5, (N3, C3, H3, W3), dtype=jnp.float32)
    target3 = jax.random.randint(k6, (N3, 1, H3, W3), 0, C3, dtype=jnp.int32)
    target3 = target3.at[0, 0, 0, :5].set(IGNORE_INDEX)
    loss3 = jax.block_until_ready(ce_dice_loss(logits3, target3, tile_s=128))
    ref3 = jax.block_until_ready(ce_dice_loss_ref(logits3, target3))
    assert jnp.isfinite(loss3), "non-finite loss from kernel (split case)"
    assert abs(float(loss3) - float(ref3)) < 5e-4, (float(loss3), float(ref3))

    print("KERNEL_OK")
</pallas_src>

<mosaic_0001>
module attributes {stable_mosaic.version = 11 : i64} {
  func.func @_ce_dice_kernel(%arg0: i32, %arg1: i32, %arg2: i32, %arg3: memref<1x4x256xf32, #tpu.memory_space<vmem>>, %arg4: memref<1x1x256xi32, #tpu.memory_space<vmem>>, %arg5: memref<1x1x4x1xf32, #tpu.memory_space<vmem>>, %arg6: memref<1x1x4x1xf32, #tpu.memory_space<vmem>>, %arg7: memref<1x1x1x1xf32, #tpu.memory_space<vmem>>, %arg8: memref<1x1x1x1xf32, #tpu.memory_space<vmem>>, %arg9: memref<4x1xf32, #tpu.memory_space<vmem>>, %arg10: memref<4x1xf32, #tpu.memory_space<vmem>>, %arg11: memref<1x1xf32, #tpu.memory_space<vmem>>, %arg12: memref<1x1xf32, #tpu.memory_space<vmem>>) attributes {dimension_semantics = [#tpu.dimension_semantics<parallel>, #tpu.dimension_semantics<parallel>, #tpu.dimension_semantics<arbitrary>], iteration_bounds = array<i64: 1, 2, 1>, scalar_prefetch = 0 : i64, scratch_operands = 4 : i64, tpu.core_type = #tpu.core_type<tc>, window_params = [{transform_indices = @transform_0, window_bounds = array<i64: 1, 4, 256>}, {transform_indices = @transform_1, window_bounds = array<i64: 1, 1, 256>}, {transform_indices = @transform_2, window_bounds = array<i64: 1, 1, 4, 1>}, {transform_indices = @transform_3, window_bounds = array<i64: 1, 1, 4, 1>}, {transform_indices = @transform_4, window_bounds = array<i64: 1, 1, 1, 1>}, {transform_indices = @transform_5, window_bounds = array<i64: 1, 1, 1, 1>}]} {
    %c0_i32 = arith.constant 0 : i32
    %0 = arith.cmpi eq, %arg2, %c0_i32 : i32
    %1 = arith.extui %0 : i1 to i32
    %c0_i32_0 = arith.constant 0 : i32
    %2 = arith.cmpi ne, %1, %c0_i32_0 : i32
    scf.if %2 {
      %cst_35 = arith.constant 0.000000e+00 : f32
      %65 = vector.broadcast %cst_35 : f32 to vector<4x1xf32>
      %c0_36 = arith.constant 0 : index
      %c0_37 = arith.constant 0 : index
      %66 = vector.load %arg9[%c0_36, %c0_37] : memref<4x1xf32, #tpu.memory_space<vmem>>, vector<4x1xf32>
      tpu.vector_store %arg9[%c0_36, %c0_37], %65 {strides = array<i32>} : memref<4x1xf32, #tpu.memory_space<vmem>>, vector<4x1xf32>,
      %cst_38 = arith.constant 0.000000e+00 : f32
      %67 = vector.broadcast %cst_38 : f32 to vector<4x1xf32>
      %c0_39 = arith.constant 0 : index
      %c0_40 = arith.constant 0 : index
      %68 = vector.load %arg10[%c0_39, %c0_40] : memref<4x1xf32, #tpu.memory_space<vmem>>, vector<4x1xf32>
      tpu.vector_store %arg10[%c0_39, %c0_40], %67 {strides = array<i32>} : memref<4x1xf32, #tpu.memory_space<vmem>>, vector<4x1xf32>,
      %cst_41 = arith.constant 0.000000e+00 : f32
      %69 = vector.broadcast %cst_41 : f32 to vector<1x1xf32>
      %c0_42 = arith.constant 0 : index
      %c0_43 = arith.constant 0 : index
      %70 = vector.load %arg11[%c0_42, %c0_43] : memref<1x1xf32, #tpu.memory_space<vmem>>, vector<1x1xf32>
      tpu.vector_store %arg11[%c0_42, %c0_43], %69 {strides = array<i32>} : memref<1x1xf32, #tpu.memory_space<vmem>>, vector<1x1xf32>,
      %cst_44 = arith.constant 0.000000e+00 : f32
      %71 = vector.broadcast %cst_44 : f32 to vector<1x1xf32>
      %c0_45 = arith.constant 0 : index
      %c0_46 = arith.constant 0 : index
      %72 = vector.load %arg12[%c0_45, %c0_46] : memref<1x1xf32, #tpu.memory_space<vmem>>, vector<1x1xf32>
      tpu.vector_store %arg12[%c0_45, %c0_46], %71 {strides = array<i32>} : memref<1x1xf32, #tpu.memory_space<vmem>>, vector<1x1xf32>,
    } else {
    }
    %c0 = arith.constant 0 : index
    %c0_1 = arith.constant 0 : index
    %c0_2 = arith.constant 0 : index
    %3 = vector.load %arg3[%c0, %c0_1, %c0_2] : memref<1x4x256xf32, #tpu.memory_space<vmem>>, vector<1x4x256xf32>
    %4 = vector.shape_cast %3 : vector<1x4x256xf32> to vector<4x256xf32>
    %c0_3 = arith.constant 0 : index
    %c0_4 = arith.constant 0 : index
    %c0_5 = arith.constant 0 : index
    %5 = vector.load %arg4[%c0_3, %c0_4, %c0_5] : memref<1x1x256xi32, #tpu.memory_space<vmem>>, vector<1x1x256xi32>
    %6 = vector.shape_cast %5 : vector<1x1x256xi32> to vector<1x256xi32>
    %7 = tpu.iota {dimensions = array<i32: 0>} : vector<4x256xi32>
    %8 = vector.broadcast %6 : vector<1x256xi32> to vector<4x256xi32>
    %9 = arith.cmpi eq, %7, %8 : vector<4x256xi32>
    %c255_i32 = arith.constant 255 : i32
    %10 = vector.broadcast %c255_i32 : i32 to vector<1x256xi32>
    %11 = arith.cmpi ne, %6, %10 : vector<1x256xi32>
    %c0_i32_6 = arith.constant 0 : i32
    %12 = vector.broadcast %c0_i32_6 : i32 to vector<1x256xi32>
    %13 = arith.cmpi sge, %6, %12 : vector<1x256xi32>
    %14 = arith.andi %11, %13 : vector<1x256xi1>
    %cst = arith.constant dense<0xFF800000> : vector<256xf32>
    %15 = vector.multi_reduction <maximumf>, %4, %cst [0] : vector<4x256xf32> to vector<256xf32>
    %16 = vector.shape_cast %15 : vector<256xf32> to vector<1x256xf32>
    %17 = vector.broadcast %16 : vector<1x256xf32> to vector<4x256xf32>
    %18 = arith.subf %4, %17 : vector<4x256xf32>
    %19 = math.exp %18 : vector<4x256xf32>
    %cst_7 = arith.constant dense<0.000000e+00> : vector<256xf32>
    %20 = vector.multi_reduction <add>, %19, %cst_7 [0] : vector<4x256xf32> to vector<256xf32>
    %21 = vector.shape_cast %20 : vector<256xf32> to vector<1x256xf32>
    %22 = tpu.reciprocal %21 {approx = true} : vector<1x256xf32> -> vector<1x256xf32>
    %23 = arith.mulf %21, %22 : vector<1x256xf32>
    %cst_8 = arith.constant 2.000000e+00 : f32
    %24 = vector.broadcast %cst_8 : f32 to vector<1x256xf32>
    %25 = arith.subf %24, %23 : vector<1x256xf32>
    %26 = arith.mulf %22, %25 : vector<1x256xf32>
    %27 = vector.broadcast %26 : vector<1x256xf32> to vector<4x256xf32>
    %28 = arith.mulf %19, %27 : vector<4x256xf32>
    %29 = math.log %21 : vector<1x256xf32>
    %30 = arith.addf %16, %29 : vector<1x256xf32>
    %cst_9 = arith.constant 0.000000e+00 : f32
    %31 = vector.broadcast %cst_9 : f32 to vector<4x256xf32>
    %32 = arith.select %9, %4, %31 : vector<4x256xi1>, vector<4x256xf32>
    %cst_10 = arith.constant dense<0.000000e+00> : vector<256xf32>
    %33 = vector.multi_reduction <add>, %32, %cst_10 [0] : vector<4x256xf32> to vector<256xf32>
    %34 = vector.shape_cast %33 : vector<256xf32> to vector<1x256xf32>
    %35 = arith.subf %30, %34 : vector<1x256xf32>
    %cst_11 = arith.constant 0.000000e+00 : f32
    %36 = vector.broadcast %cst_11 : f32 to vector<1x256xf32>
    %37 = arith.select %14, %35, %36 : vector<1x256xi1>, vector<1x256xf32>
    %c0_12 = arith.constant 0 : index
    %c0_13 = arith.constant 0 : index
    %38 = vector.load %arg11[%c0_12, %c0_13] : memref<1x1xf32, #tpu.memory_space<vmem>>, vector<1x1xf32>
    %cst_14 = arith.constant dense<0.000000e+00> : vector<1xf32>
    %39 = vector.multi_reduction <add>, %37, %cst_14 [1] : vector<1x256xf32> to vector<1xf32>
    %40 = vector.shape_cast %39 : vector<1xf32> to vector<1x1xf32>
    %41 = arith.addf %38, %40 : vector<1x1xf32>
    %c0_15 = arith.constant 0 : index
    %c0_16 = arith.constant 0 : index
    %42 = vector.load %arg11[%c0_15, %c0_16] : memref<1x1xf32, #tpu.memory_space<vmem>>, vector<1x1xf32>
    tpu.vector_store %arg11[%c0_15, %c0_16], %41 {strides = array<i32>} : memref<1x1xf32, #tpu.memory_space<vmem>>, vector<1x1xf32>,
    %c0_17 = arith.constant 0 : index
    %c0_18 = arith.constant 0 : index
    %43 = vector.load %arg12[%c0_17, %c0_18] : memref<1x1xf32, #tpu.memory_space<vmem>>, vector<1x1xf32>
    %44 = arith.extui %14 : vector<1x256xi1> to vector<1x256xi32>
    %45 = arith.sitofp %44 : vector<1x256xi32> to vector<1x256xf32>
    %cst_19 = arith.constant dense<0.000000e+00> : vector<1xf32>
    %46 = vector.multi_reduction <add>, %45, %cst_19 [1] : vector<1x256xf32> to vector<1xf32>
    %47 = vector.shape_cast %46 : vector<1xf32> to vector<1x1xf32>
    %48 = arith.addf %43, %47 : vector<1x1xf32>
    %c0_20 = arith.constant 0 : index
    %c0_21 = arith.constant 0 : index
    %49 = vector.load %arg12[%c0_20, %c0_21] : memref<1x1xf32, #tpu.memory_space<vmem>>, vector<1x1xf32>
    tpu.vector_store %arg12[%c0_20, %c0_21], %48 {strides = array<i32>} : memref<1x1xf32, #tpu.memory_space<vmem>>, vector<1x1xf32>,
    %c0_22 = arith.constant 0 : index
    %c0_23 = arith.constant 0 : index
    %50 = vector.load %arg9[%c0_22, %c0_23] : memref<4x1xf32, #tpu.memory_space<vmem>>, vector<4x1xf32>
    %cst_24 = arith.constant 0.000000e+00 : f32
    %51 = vector.broadcast %cst_24 : f32 to vector<4x256xf32>
    %52 = arith.select %9, %28, %51 : vector<4x256xi1>, vector<4x256xf32>
    %cst_25 = arith.constant dense<0.000000e+00> : vector<4xf32>
    %53 = vector.multi_reduction <add>, %52, %cst_25 [1] : vector<4x256xf32> to vector<4xf32>
    %54 = vector.shape_cast %53 : vector<4xf32> to vector<4x1xf32>
    %55 = arith.addf %50, %54 : vector<4x1xf32>
    %c0_26 = arith.constant 0 : index
    %c0_27 = arith.constant 0 : index
    %56 = vector.load %arg9[%c0_26, %c0_27] : memref<4x1xf32, #tpu.memory_space<vmem>>, vector<4x1xf32>
    tpu.vector_store %arg9[%c0_26, %c0_27], %55 {strides = array<i32>} : memref<4x1xf32, #tpu.memory_space<vmem>>, vector<4x1xf32>,
    %c0_28 = arith.constant 0 : index
    %c0_29 = arith.constant 0 : index
    %57 = vector.load %arg10[%c0_28, %c0_29] : memref<4x1xf32, #tpu.memory_space<vmem>>, vector<4x1xf32>
    %cst_30 = arith.constant dense<0.000000e+00> : vector<4xf32>
    %58 = vector.multi_reduction <add>, %28, %cst_30 [1] : vector<4x256xf32> to vector<4xf32>
    %59 = vector.shape_cast %58 : vector<4xf32> to vector<4x1xf32>
    %60 = arith.addf %57, %59 : vector<4x1xf32>
    %c0_31 = arith.constant 0 : index
    %c0_32 = arith.constant 0 : index
    %61 = vector.load %arg10[%c0_31, %c0_32] : memref<4x1xf32, #tpu.memory_space<vmem>>, vector<4x1xf32>
    tpu.vector_store %arg10[%c0_31, %c0_32], %60 {strides = array<i32>} : memref<4x1xf32, #tpu.memory_space<vmem>>, vector<4x1xf32>,
    %c0_i32_33 = arith.constant 0 : i32
    %62 = arith.cmpi eq, %arg2, %c0_i32_33 : i32
    %63 = arith.extui %62 : i1 to i32
    %c0_i32_34 = arith.constant 0 : i32
    %64 = arith.cmpi ne, %63, %c0_i32_34 : i32
    scf.if %64 {
      %c0_35 = arith.constant 0 : index
      %c0_36 = arith.constant 0 : index
      %65 = vector.load %arg9[%c0_35, %c0_36] : memref<4x1xf32, #tpu.memory_space<vmem>>, vector<4x1xf32>
      %c0_37 = arith.constant 0 : index
      %c0_38 = arith.constant 0 : index
      %c0_39 = arith.constant 0 : index
      %c0_40 = arith.constant 0 : index
      %66 = vector.load %arg5[%c0_37, %c0_38, %c0_39, %c0_40] : memref<1x1x4x1xf32, #tpu.memory_space<vmem>>, vector<1x1x4x1xf32>
      %67 = vector.shape_cast %66 : vector<1x1x4x1xf32> to vector<4x1xf32>
      %68 = vector.shape_cast %65 : vector<4x1xf32> to vector<1x1x4x1xf32>
      tpu.vector_store %arg5[%c0_37, %c0_38, %c0_39, %c0_40], %68 {strides = array<i32>} : memref<1x1x4x1xf32, #tpu.memory_space<vmem>>, vector<1x1x4x1xf32>,
      %c0_41 = arith.constant 0 : index
      %c0_42 = arith.constant 0 : index
      %69 = vector.load %arg10[%c0_41, %c0_42] : memref<4x1xf32, #tpu.memory_space<vmem>>, vector<4x1xf32>
      %c0_43 = arith.constant 0 : index
      %c0_44 = arith.constant 0 : index
      %c0_45 = arith.constant 0 : index
      %c0_46 = arith.constant 0 : index
      %70 = vector.load %arg6[%c0_43, %c0_44, %c0_45, %c0_46] : memref<1x1x4x1xf32, #tpu.memory_space<vmem>>, vector<1x1x4x1xf32>
      %71 = vector.shape_cast %70 : vector<1x1x4x1xf32> to vector<4x1xf32>
      %72 = vector.shape_cast %69 : vector<4x1xf32> to vector<1x1x4x1xf32>
      tpu.vector_store %arg6[%c0_43, %c0_44, %c0_45, %c0_46], %72 {strides = array<i32>} : memref<1x1x4x1xf32, #tpu.memory_space<vmem>>, vector<1x1x4x1xf32>,
      %c0_47 = arith.constant 0 : index
      %c0_48 = arith.constant 0 : index
      %73 = vector.load %arg11[%c0_47, %c0_48] : memref<1x1xf32, #tpu.memory_space<vmem>>, vector<1x1xf32>
      %c0_49 = arith.constant 0 : index
      %c0_50 = arith.constant 0 : index
      %c0_51 = arith.constant 0 : index
      %c0_52 = arith.constant 0 : index
      %74 = vector.load %arg7[%c0_49, %c0_50, %c0_51, %c0_52] : memref<1x1x1x1xf32, #tpu.memory_space<vmem>>, vector<1x1x1x1xf32>
      %75 = vector.shape_cast %74 : vector<1x1x1x1xf32> to vector<1x1xf32>
      %76 = vector.shape_cast %73 : vector<1x1xf32> to vector<1x1x1x1xf32>
      tpu.vector_store %arg7[%c0_49, %c0_50, %c0_51, %c0_52], %76 {strides = array<i32>} : memref<1x1x1x1xf32, #tpu.memory_space<vmem>>, vector<1x1x1x1xf32>,
      %c0_53 = arith.constant 0 : index
      %c0_54 = arith.constant 0 : index
      %77 = vector.load %arg12[%c0_53, %c0_54] : memref<1x1xf32, #tpu.memory_space<vmem>>, vector<1x1xf32>
      %c0_55 = arith.constant 0 : index
      %c0_56 = arith.constant 0 : index
      %c0_57 = arith.constant 0 : index
      %c0_58 = arith.constant 0 : index
      %78 = vector.load %arg8[%c0_55, %c0_56, %c0_57, %c0_58] : memref<1x1x1x1xf32, #tpu.memory_space<vmem>>, vector<1x1x1x1xf32>
      %79 = vector.shape_cast %78 : vector<1x1x1x1xf32> to vector<1x1xf32>
      %80 = vector.shape_cast %77 : vector<1x1xf32> to vector<1x1x1x1xf32>
      tpu.vector_store %arg8[%c0_55, %c0_56, %c0_57, %c0_58], %80 {strides = array<i32>} : memref<1x1x1x1xf32, #tpu.memory_space<vmem>>, vector<1x1x1x1xf32>,
    } else {
    }
    return
  }
  func.func @transform_0(%arg0: i32, %arg1: i32, %arg2: i32) -> (i32, i32, i32) {
    %c1_i32 = arith.constant 1 : i32
    %0 = arith.muli %arg0, %c1_i32 : i32
    %1 = arith.addi %0, %arg2 : i32
    %c0_i32 = arith.constant 0 : i32
    %2 = arith.minsi %1, %c0_i32 : i32
    %c0_i32_0 = arith.constant 0 : i32
    %c0_i32_1 = arith.constant 0 : i32
    return %arg1, %c0_i32_0, %2 : i32, i32, i32
  }
  func.func @transform_1(%arg0: i32, %arg1: i32, %arg2: i32) -> (i32, i32, i32) {
    %c1_i32 = arith.constant 1 : i32
    %0 = arith.muli %arg0, %c1_i32 : i32
    %1 = arith.addi %0, %arg2 : i32
    %c0_i32 = arith.constant 0 : i32
    %2 = arith.minsi %1, %c0_i32 : i32
    %c0_i32_0 = arith.constant 0 : i32
    %c0_i32_1 = arith.constant 0 : i32
    return %arg1, %c0_i32_0, %2 : i32, i32, i32
  }
  func.func @transform_2(%arg0: i32, %arg1: i32, %arg2: i32) -> (i32, i32, i32, i32) {
    %c0_i32 = arith.constant 0 : i32
    %c0_i32_0 = arith.constant 0 : i32
    %c0_i32_1 = arith.constant 0 : i32
    return %arg0, %arg1, %c0_i32, %c0_i32_0 : i32, i32, i32, i32
  }
  func.func @transform_3(%arg0: i32, %arg1: i32, %arg2: i32) -> (i32, i32, i32, i32) {
    %c0_i32 = arith.constant 0 : i32
    %c0_i32_0 = arith.constant 0 : i32
    %c0_i32_1 = arith.constant 0 : i32
    return %arg0, %arg1, %c0_i32, %c0_i32_0 : i32, i32, i32, i32
  }
  func.func @transform_4(%arg0: i32, %arg1: i32, %arg2: i32) -> (i32, i32, i32, i32) {
    %c0_i32 = arith.constant 0 : i32
    %c0_i32_0 = arith.constant 0 : i32
    %c0_i32_1 = arith.constant 0 : i32
    return %arg0, %arg1, %c0_i32, %c0_i32_0 : i32, i32, i32, i32
  }
  func.func @transform_5(%arg0: i32, %arg1: i32, %arg2: i32) -> (i32, i32, i32, i32) {
    %c0_i32 = arith.constant 0 : i32
    %c0_i32_0 = arith.constant 0 : i32
    %c0_i32_1 = arith.constant 0 : i32
    return %arg0, %arg1, %c0_i32, %c0_i32_0 : i32, i32, i32, i32
  }
}

</mosaic_0001>

<bundles_post_ra>
// kernel: tpu_custom_call.1
= control target key start
LH: loop header
LB: loop body
LE: loop exit
PB: predicated region body
PF: predicated region fallthrough
CT: control target
= control target key end

     0   :  { %11 = vsyncpa [#allocation7], 0  ;;  %s1333_s0 = inlined_call_operand.hbm [shape: f32[2,4,256], index: 0, kind: input, shape index: {}]   ;;  %s1334_s1 = inlined_call_operand.hbm [shape: s32[2,1,256], index: 1, kind: input, shape index: {}]   ;;  %s1335_s2 = inlined_call_operand.vmem [shape: f32[1,2,4,1], index: 2, kind: output, shape index: {0}]   ;;  %s1336_s3 = inlined_call_operand.vmem [shape: f32[1,2,4,1], index: 3, kind: output, shape index: {1}]   ;;  %s1337_s4 = inlined_call_operand.vmem [shape: f32[1,2,1,1], index: 4, kind: output, shape index: {2}]   ;;  %s1338_s5 = inlined_call_operand.vmem [shape: f32[1,2,1,1], index: 5, kind: output, shape index: {3}]  }
   0x1   :  { %13 = vsyncpa [#allocation7 + $0x1], 0 }
   0x2   :  { %14 = vsyncpa [#allocation9], 0 }
   0x3   :  { %16 = vsyncpa [#allocation9 + $0x1], 0  ;;  %s1092_s18 = smov 0   ;;  %s1094_s19 = smov 0  }
   0x4   :  { %s1096_s20 = smov 0   ;;  %s1098_s21 = smov 0  }
   0x5   :  { %s1100_s22 = smov 0   ;;  %s1102_s23 = smov 0  }
   0x6 LB: > { %s849_s24 = sadd.s32 4294967295, %s1056_s23   ;;  %s37_s25 = sadd.s32 1, %s1052_s22  ;;  %s1056_s23 = sphi %s1102_s23, %s22_s23   ;;  %s1052_s22 = sphi %s1100_s22, %s1356_s22   ;;  %s1048_s21 = sphi %s1098_s21, %s1355_s21   ;;  %s1044_s20 = sphi %s1096_s20, %s1354_s20   ;;  %s1040_s19 = sphi %s1094_s19, %s1353_s19   ;;  %s1036_s18 = sphi %s1092_s18, %s1352_s18  }
   0x7   : > { %p39_p0 = scmp.ge.s32.totalorder %s37_s25, 2  ;;  %s56_s26 = sadd.s32 1, %s1044_s20 }
   0x8   : > { %p63_p1 = scmp.ne.s32.totalorder %s1044_s20, %s1040_s19  ;;  %p64_p2 = scmp.eq.s32.totalorder %s1056_s23, 0 }
   0x9   : > { %s1358_s25 = smov (%p39_p0, %s37_s25), 0  ;;  %p69_p4 = scmp.ne.s32.totalorder %s1040_s19, %s1036_s18 }
   0xa   : > { %p1128_p3 = por %p64_p2, %p63_p1  ;;  %s51_s28 = ssub.s32 %s1052_s22, %s1358_s25 }
   0xb   : > { %p70_p5 = scmp.eq.s32.totalorder %s849_s24, 0  ;;  %p54_p6 = scmp.eq.s32.totalorder %s51_s28, 0 }
   0xc   : > { %p880_p8 = scmp.lt.s32.totalorder %s1056_s23, 2  ;;  %s1144_s6 = sand.u32 1, %s1044_s20  }
   0xd   : > { %p1135_p7 = por %p70_p5, %p69_p4  ;;  %s867_s7 = sshll.u32 %s1052_s22, 7 }
   0xe   : > { %s1141_s30 = scalar_select %p54_p6, %s1044_s20, %s56_s26  }
   0xf   : > { %s1341_s29 = scalar_select %p1135_p7, 1, 0 }
  0x10   : > { %s853_s8 = sshll.u32 %s1144_s6, 3  ;;  %s1151_s11 = scalar_lea.hbm %s1333_s0, %s867_s7 }
  0x11   : > { %s243_s12 = scalar_lea.vmem [#allocation6], %s853_s8  ;;  %p1155_p9 = pnand %p880_p8, %p1128_p3 }
  0x12   : > { %s256_s13 = sshll.u32 %s243_s12, 4  ;;  %s240_s15 = scalar_lea.sflag [#allocation7], %s1144_s6  ;;  %s1159_s13 = int_to_ptr.vmem [resolvable:$true] %s256_s13 }
  0x13   : > { %s942_s16 = scalar_lea.hbm %s1151_s11, 128  ;;  %p944_p13 = pneg %p1155_p9 }
  0x14   : > { %p943_p12 = scmp.ne.s32.totalorder %s1151_s11, %s942_s16  ;;  %s947_s24 = scalar_lea.hbm %s1333_s0, 256 }
  0x15   : > { %p948_p2 = scmp.lt.u32.totalorder %s1151_s11, %s1333_s0  ;;  %p949_p3 = scmp.lt.u32.totalorder %s947_s24, %s942_s16 }
  0x16   : > { %p945_p0 = pnand %p944_p13, %p943_p12  ;;  %p951_p5 = scmp.lt.u32.totalorder %s942_s16, %s1151_s11 }
  0x17   : > { %p950_p4 = por %p949_p3, %p948_p2 }
  0x18   : > { %p946_p1 = pneg %p945_p0 }
  0x19   : > { %p952_p6 = por %p951_p5, %p950_p4 }
  0x1b   : > { %p953_p8 = pnand %p952_p6, %p946_p1 }
  0x1d   : > { %956 = shalt.err (!%p953_p8)
}
  0x1e   : > { %s957_s28 = scalar_lea.vmem %s1159_s13, 128  ;;  %s1058_s7 = smov [#allocation6]  }
  0x1f   : > { %p958_p12 = scmp.ne.s32.totalorder %s1159_s13, %s957_s28  ;;  %s962_s8 = sshll.u32 %s1058_s7, 4  ;;  %s963_s8 = int_to_ptr.vmem [resolvable:$false] %s962_s8 }
  0x20   : > { %s964_s9 = scalar_lea.vmem %s963_s8, 256  ;;  %p965_p11 = scmp.lt.s32.totalorder %s1159_s13, %s963_s8 }
  0x21   : > { %p960_p0 = pnand %p958_p12, %p944_p13  ;;  %p966_p2 = scmp.lt.s32.totalorder %s964_s9, %s957_s28 }
  0x23   : > { %p961_p10 = pneg %p960_p0  ;;  %p967_p3 = por %p966_p2, %p965_p11 }
  0x25   : > { %p968_p4 = pnand %p967_p3, %p961_p10 }
  0x27   : > { %971 = shalt.err (!%p968_p4)
}
  0x28   : > { %876 = dma.hbm_to_vmem [thread:$0]  (!%p1155_p9), %s1151_s11, 128, %s1159_s13, %s240_s15  }
  0x29   : > { %p1343_p1 = scmp.lt.s32.totalorder %s1056_s23, 3  ;;  %p1344_p5 = scmp.ge.s32.totalorder %s1056_s23, 1 }
  0x2a   : > { %s856_s12 = sshll.u32 %s1144_s6, 1  ;;  %s868_s16 = sshll.u32 %s1052_s22, 5 }
  0x2b   : > { %p1193_p6 = pnand %p1344_p5, %p1343_p1  ;;  %s1202_s24 = scalar_lea.hbm %s1334_s1, %s868_s16 }
  0x2c   : > { %s267_s26 = scalar_lea.vmem [#allocation8], %s856_s12  ;;  %s264_s11 = scalar_lea.sflag [#allocation9], %s1144_s6 }
  0x2d   : > { %s1345_s10 = scalar_select %p1193_p6, 1, 0 }
  0x2e   : > { %s280_s27 = sshll.u32 %s267_s26, 4  ;;  %s972_s13 = scalar_lea.hbm %s1202_s24, 32  ;;  %s281_s27 = int_to_ptr.vmem [resolvable:$true] %s280_s27 }
  0x2f   : > { %p973_p10 = scmp.ne.s32.totalorder %s1202_s24, %s972_s13  ;;  %s977_s7 = scalar_lea.hbm %s1334_s1, 64 }
  0x30   : > { %p978_p12 = scmp.lt.u32.totalorder %s1202_s24, %s1334_s1  ;;  %p979_p0 = scmp.lt.u32.totalorder %s977_s7, %s972_s13 }
  0x31   : > { %p975_p11 = pnand %p973_p10, %p944_p13  ;;  %p981_p3 = scmp.lt.u32.totalorder %s972_s13, %s1202_s24 }
  0x32   : > { %p980_p2 = por %p979_p0, %p978_p12 }
  0x33   : > { %p976_p8 = pneg %p975_p11 }
  0x34   : > { %p982_p4 = por %p981_p3, %p980_p2 }
  0x36   : > { %p983_p1 = pnand %p982_p4, %p976_p8 }
  0x38   : > { %986 = shalt.err (!%p983_p1)
}
  0x39   : > { %s987_s6 = scalar_lea.vmem %s281_s27, 32  ;;  %s1059_s12 = smov [#allocation8]  }
  0x3a   : > { %p988_p5 = scmp.ne.s32.totalorder %s281_s27, %s987_s6  ;;  %s992_s16 = sshll.u32 %s1059_s12, 4  ;;  %s993_s16 = int_to_ptr.vmem [resolvable:$false] %s992_s16 }
  0x3b   : > { %s994_s17 = scalar_lea.vmem %s993_s16, 64  ;;  %p995_p7 = scmp.lt.s32.totalorder %s281_s27, %s993_s16 }
  0x3c   : > { %p990_p10 = pnand %p988_p5, %p944_p13  ;;  %p996_p6 = scmp.lt.s32.totalorder %s994_s17, %s987_s6 }
  0x3e   : > { %p991_p11 = pneg %p990_p10  ;;  %p997_p0 = por %p996_p6, %p995_p7 }
  0x40   : > { %p998_p12 = pnand %p997_p0, %p991_p11 }
  0x42   : > { %1001 = shalt.err (!%p998_p12)
}
  0x43   : > { %879 = dma.hbm_to_vmem [thread:$0]  (!%p1155_p9), %s1202_s24, 32, %s281_s27, %s264_s11  }
  0x44   : > { %p1346_p8 = scmp.ne.s32.totalorder %s1345_s10, 0 }
  0x45   : > { %s291_s18 = sand.u32 (!%p1346_p8), 1, %s1040_s19   ;;  %p1347_p13 = scmp.ne.s32.totalorder (!%p1346_p8), %s1341_s29, 0 }
  0x46   : > { %289 = sbr.rel (%p1346_p8) target bundleno = 315 (0x13b), region = 28  ;;  %s860_s26 = sshll.u32 (!%p1346_p8), %s291_s18, 3 }
  0x47   : > { %s292_s13 = scalar_lea.sflag (!%p1346_p8), [#allocation7], %s291_s18  ;;  %s295_s15 = scalar_lea.vmem (!%p1346_p8), [#allocation6], %s860_s26 }
  0x4d   : > { %1027 = dma.done.wait (%p1347_p13), %s292_s13, 128  }
  0x4e   : > { %1029 = vsyncadd (%p1347_p13), %s292_s13, 4294967168  ;;  %s861_s28 = sshll.u32 %s291_s18, 1  ;;  %s301_s7 = scalar_lea.sflag [#allocation9], %s291_s18 }
  0x4f   : > { %s304_s14 = scalar_lea.vmem [#allocation8], %s861_s28 }
  0x50   : > { %1031 = dma.done.wait (%p1347_p13), %s301_s7, 32  }
  0x51   : > { %1033 = vsyncadd (%p1347_p13), %s301_s7, 4294967264  ;;  %vm406_vm0 = vcmask 0   ;;  %v1060_v0 = vmov 0.0   ;;  %vm429_vm1 = vcmask 1043456   ;;  %v409_v1 = vld [vmem:[%s295_s15] sm:$0xff]  ;;  %v411_v14 = vlaneseq  ;;  %p371_p7 = scmp.lt.s32.totalorder %s1048_s21, 1 }
  0x52   : > { %407 = vst.msk [vmem:[#allocation4] sm:$0x1] %vm406_vm0, %v1060_v0  ;;  %408 = vst.msk [vmem:[#allocation5] sm:$0x1] %vm406_vm0, %v1060_v0  ;;  %v427_v2 = vcombine.high %v409_v1, %v409_v1  ;;  %v430_v3 = vsel %vm429_vm1, %v409_v1, -inf  ;;  %vm536_vm7 = vcmask 1040384  }
  0x53   : > { %v431_v4 = vrot.slane %v430_v3, 4  ;;  %v1241_v18 = vshrl.u32 %v411_v14, 7  ;;  %v1246_v23 = vld [vmem:[%s304_s14] sm:$0x3]  ;;  %v1061_v59 = vmov 1966171168  }
  0x54   : > { %v437_v5 = vsel %vm429_vm1, %v427_v2, -inf  ;;  %v509_v60 = vunpack.c.l.s4 %v1061_v59  ;;  %vm423_vm4 = vcmp.ne.s32.totalorder %v1246_v23, 255  ;;  %vm424_vm5 = vcmp.ge.s32.totalorder %v1246_v23, 0  ;;  %s1360_s21 = smov (!%p371_p7, %s1048_s21), 1 }
  0x55   : > { %v432_v6 = vmax.f32 %v430_v3, %v431_v4  ;;  %v438_v7 = vrot.slane %v437_v5, 4  ;;  %v1244_v21 = vsub.s32 0, %v1241_v18  ;;  %v1249_v24 = vsub.s32 1, %v1241_v18  ;;  %vm425_vm6 = vmand %vm423_vm4, %vm424_vm5  ;;  %s862_s29 = sshll.u32 %s1360_s21, 2  ;;  %s391_s9 = scalar_lea.vmem %s1337_s4, %s1360_s21 }
  0x56   : > { %vm403_vm8 = vcmask 3072   ;;  %s376_s27 = scalar_lea.vmem %s1335_s2, %s862_s29  ;;  %s384_s16 = scalar_lea.vmem %s1336_s3, %s862_s29 }
  0x57   : > { %v433_v8 = vrot.slane %v432_v6, 2  ;;  %v439_v9 = vmax.f32 %v437_v5, %v438_v7  ;;  %v416_v25 = vrot.slane %v1246_v23, %v1244_v21  ;;  %v420_v26 = vrot.slane %v1246_v23, %v1249_v24  ;;  %404 = vst.msk [vmem:[#allocation2] sm:$0xf] %vm403_vm8, %v1060_v0  ;;  %405 = vst.msk [vmem:[#allocation3] sm:$0xf] %vm403_vm8, %v1060_v0  ;;  %s398_s26 = scalar_lea.vmem %s1338_s5, %s1360_s21 }
  0x59   : > { %v434_v10 = vmax.f32 %v432_v6, %v433_v8  ;;  %v440_v11 = vrot.slane %v439_v9, 2  ;;  %vm1256_vm2 = vcmp.eq.s32.totalorder %v1241_v18, %v416_v25  ;;  %vm1261_vm3 = vcmp.eq.s32.totalorder %v1241_v18, %v420_v26 }
  0x5a   : > { %v487_v29 = vsel %vm1256_vm2, %v409_v1, 0.0  ;;  %v488_v33 = vsel %vm1261_vm3, %v427_v2, 0.0  ;;  %v510_v8 = vunpack.c.0.s8 %v509_v60 }
  0x5b   : > { %v435_v12 = vrot.slane %v434_v10, 1  ;;  %v441_v13 = vmax.f32 %v439_v9, %v440_v11  ;;  %v489_v35 = vsel %vm429_vm1, %v487_v29, 0.0  ;;  %v496_v39 = vsel %vm429_vm1, %v488_v33, 0.0 }
  0x5c   : > { %v490_v40 = vrot.slane %v489_v35, 4  ;;  %v497_v43 = vrot.slane %v496_v39, 4 }
  0x5d   : > { %v436_v15 = vmax.f32 %v434_v10, %v435_v12  ;;  %v442_v16 = vrot.slane %v441_v13, 1 }
  0x5e   : > { %v491_v46 = vadd.f32 %v490_v40, %v489_v35  ;;  %v498_v49 = vadd.f32 %v497_v43, %v496_v39  ;;  %v566_v28 = vld [vmem:[#allocation2] sm:$0xf] }
  0x5f   : > { %v443_v17 = vmax.f32 %v441_v13, %v442_v16 }
  0x60   : > { %v492_v52 = vrot.slane %v491_v46, 2  ;;  %v499_v54 = vrot.slane %v498_v49, 2 }
  0x61   : > { %v446_v19 = vcombine.low %v436_v15, %v443_v17 }
  0x62   : > { %v493_v55 = vadd.f32 %v492_v52, %v491_v46  ;;  %v500_v56 = vadd.f32 %v499_v54, %v498_v49 }
  0x63   : > { %v448_v20 = vsub.f32 %v409_v1, %v446_v19  ;;  %v513_v19 = vsub.s32 %v510_v8, %v1241_v18 }
  0x64   : > { %v494_v57 = vrot.slane %v493_v55, 1  ;;  %v501_v58 = vrot.slane %v500_v56, 1 }
  0x65   : > { %v449_v22 = vmul.f32 1.442695, %v448_v20 }
  0x66   : > { %v495_v1 = vadd.f32 %v494_v57, %v493_v55  ;;  %v502_v7 = vadd.f32 %v501_v58, %v500_v56 }
  0x67   : > { %932 = vpow2.f32 %v449_v22 }
  0x71   : > { %v933_v30 = vpop.eup %932 }
  0x72   : > { %v452_v31 = vcombine.high %v933_v30, %v933_v30  ;;  %v454_v32 = vsel %vm429_vm1, %v933_v30, 0.0 }
  0x73   : > { %v455_v34 = vrot.slane %v454_v32, 4 }
  0x74   : > { %v461_v36 = vsel %vm429_vm1, %v452_v31, 0.0 }
  0x75   : > { %v456_v37 = vadd.f32 %v455_v34, %v454_v32  ;;  %v462_v38 = vrot.slane %v461_v36, 4 }
  0x77   : > { %v457_v41 = vrot.slane %v456_v37, 2  ;;  %v463_v42 = vadd.f32 %v462_v38, %v461_v36 }
  0x79   : > { %v458_v44 = vadd.f32 %v457_v41, %v456_v37  ;;  %v464_v45 = vrot.slane %v463_v42, 2 }
  0x7b   : > { %v459_v47 = vrot.slane %v458_v44, 1  ;;  %v465_v48 = vadd.f32 %v464_v45, %v463_v42  ;;  %v524_v45 = vld [vmem:[#allocation4] sm:$0x1] }
  0x7d   : > { %v460_v50 = vadd.f32 %v459_v47, %v458_v44  ;;  %v466_v51 = vrot.slane %v465_v48, 1 }
  0x7f   : > { %v467_v53 = vadd.f32 %v466_v51, %v465_v48  ;;  %934 = vlog2.f32 %v460_v50  ;;  %v545_v51 = vld [vmem:[#allocation5] sm:$0x1] }
  0x80   : > { %936 = vrcp.f32 %v460_v50 }
  0x81   : > { %938 = vlog2.f32 %v467_v53 }
  0x82   : > { %940 = vrcp.f32 %v467_v53 }
  0x89   : > { %v935_v61 = vpop.eup %934 }
  0x8a   : > { %v937_v62 = vpop.eup %936  ;;  %v482_v63 = vmul.f32 0.6931472, %v935_v61 }
  0x8b   : > { %v939_v2 = vpop.eup %938  ;;  %v470_v3 = vmul.f32 %v937_v62, %v460_v50  ;;  %v580_v50 = vld [vmem:[#allocation3] sm:$0xf] }
  0x8c   : > { %v941_v4 = vpop.eup %940  ;;  %v484_v5 = vmul.f32 0.6931472, %v939_v2  ;;  %v485_v6 = vadd.f32 %v482_v63, %v436_v15  ;;  %v864_v15 = vsel %vm425_vm6, 1.0, %v1060_v0 }
  0x8d   : > { %v471_v9 = vmul.f32 %v941_v4, %v467_v53  ;;  %v472_v10 = vsub.f32 2.0, %v470_v3  ;;  %v556_v33 = vrot.slane %v864_v15, %v1249_v24 }
  0x8e   : > { %v486_v11 = vadd.f32 %v484_v5, %v443_v17  ;;  %v503_v12 = vsub.f32 %v485_v6, %v495_v1  ;;  %v552_v17 = vrot.slane %v864_v15, %v1244_v21 }
  0x8f   : > { %v473_v13 = vsub.f32 2.0, %v471_v9  ;;  %v474_v14 = vmul.f32 %v937_v62, %v472_v10  ;;  %v560_v43 = vsel %vm536_vm7, %v556_v33, 0.0 }
  0x90   : > { %v504_v16 = vsub.f32 %v486_v11, %v502_v7  ;;  %v559_v38 = vsel %vm536_vm7, %v552_v17, 0.0 }
  0x91   : > { %v475_v20 = vmul.f32 %v941_v4, %v473_v13 }
  0x92   : > { %v507_v22 = vcombine.low %v503_v12, %v504_v16 }
  0x93   : > { %v478_v25 = vcombine.low %v474_v14, %v475_v20 }
  0x94   : > { %v514_v26 = vrot.slane %v507_v22, %v513_v19 }
  0x95   : > { %v480_v29 = vmul.f32 %v933_v30, %v478_v25 }
  0x96   : > { %v521_v31 = vrot.slane %v514_v26, %v513_v19 }
  0x97   : > { %v568_v32 = vcombine.high %v480_v29, %v480_v29  ;;  %v570_v23 = vsel %vm1256_vm2, %v480_v29, 0.0  ;;  %v581_v39 = vsel %vm429_vm1, %v480_v29, 0.0 }
  0x98   : > { %v523_v34 = vsel %vm425_vm6, %v521_v31, 0.0  ;;  %v572_v18 = vsel %vm429_vm1, %v570_v23, 0.0 }
  0x99   : > { %v529_v35 = vrot.slane %v523_v34, %v1244_v21  ;;  %v533_v36 = vrot.slane %v523_v34, %v1249_v24  ;;  %v571_v30 = vsel %vm1261_vm3, %v568_v32, 0.0  ;;  %v582_v27 = vsel %vm429_vm1, %v568_v32, 0.0 }
  0x9a   : > { %v573_v37 = vsel %vm429_vm1, %v571_v30, 0.0  ;;  %v583_v21 = vadd.f32 %v582_v27, %v581_v39  ;;  %v561_v24 = vadd.f32 %v560_v43, %v559_v38 }
  0x9b   : > { %v537_v40 = vsel %vm536_vm7, %v529_v35, 0.0  ;;  %v538_v41 = vsel %vm536_vm7, %v533_v36, 0.0  ;;  %v574_v42 = vadd.f32 %v573_v37, %v572_v18 }
  0x9c   : > { %v539_v44 = vadd.f32 %v538_v41, %v537_v40 }
  0x9d   : > { %575 = vadd.xlane.f32.xlu1 %v574_v42 }
  0x9e   : > { %540 = vadd.xlane.f32.xlu0 %v539_v44 }
  0xa1   : > { %584 = vadd.xlane.f32.xlu1 %v583_v21 }
  0xa2   : > { %562 = vadd.xlane.f32.xlu0 %v561_v24 }
 0x12a   : > { %v576_v46 = vpop.xlane.xlu1 %575 }
 0x12b   : > { %v541_v47 = vpop.xlane.xlu0 %540  ;;  %v577_v48 = vadd.f32 %v576_v46, %v566_v28 }
 0x12c   : > { %v542_v49 = vadd.f32 %v541_v47, %v524_v45 }
 0x12d   : > { %579 = vst.msk [vmem:[#allocation2] sm:$0xf] %vm403_vm8, %v577_v48 }
 0x12e   : > { %544 = vst.msk [vmem:[#allocation4] sm:$0x1] %vm406_vm0, %v542_v49  ;;  %v585_v52 = vpop.xlane.xlu1 %584 }
 0x12f   : > { %v563_v53 = vpop.xlane.xlu0 %562  ;;  %v586_v54 = vadd.f32 %v585_v52, %v580_v50 }
 0x130   : > { %v564_v55 = vadd.f32 %v563_v53, %v545_v51 }
 0x131   : > { %587 = vst.msk [vmem:[#allocation3] sm:$0xf] %vm403_vm8, %v586_v54 }
 0x132   : > { %565 = vst.msk [vmem:[#allocation5] sm:$0x1] %vm406_vm0, %v564_v55 }
 0x134   : > { %v591_v0 = vld [vmem:[#allocation2] sm:$0xf] }
 0x135   : > { %v595_v56 = vld [vmem:[#allocation4] sm:$0x1]  ;;  %592 = vst.msk [vmem:[%s376_s27] sm:$0xf] %vm403_vm8, %v591_v0 }
 0x136   : > { %596 = vst.msk [vmem:[%s391_s9] sm:$0x1] %vm406_vm0, %v595_v56 }
 0x138   : > { %v593_v57 = vld [vmem:[#allocation3] sm:$0xf] }
 0x139   : > { %v597_v58 = vld [vmem:[#allocation5] sm:$0x1]  ;;  %594 = vst.msk [vmem:[%s384_s16] sm:$0xf] %vm403_vm8, %v593_v57 }
 0x13a   : > { %598 = vst.msk [vmem:[%s398_s26] sm:$0x1] %vm406_vm0, %v597_v58 }
 0x13b PF: > { %s22_s23 = sadd.s32 1, %s1056_s23   ;;  %s1352_s18 = smov %s1040_s19 }
 0x13c   : > { %p19_p9 = scmp.ge.s32.totalorder %s22_s23, 4   ;;  %s1353_s19 = smov %s1044_s20 }
 0x13d   : > { %s1354_s20 = smov %s1141_s30  ;;  %s1355_s21 = smov %s1052_s22 }
 0x13e   : > { %s1356_s22 = smov %s1358_s25  ;;  %21 = sbr.rel (!%p19_p9) target bundleno = 6 (0x6), region = 125 }
 0x145   :  { %688 = vsyncpa [#allocation7], 1 }
 0x146   :  { %690 = vsyncpa [#allocation7 + $0x1], 1 }
 0x147   :  { %691 = vsyncpa [#allocation9], 1 }
 0x148   :  { %693 = vsyncpa [#allocation9 + $0x1], 1 }

</bundles_post_ra>
